<compile_context>
chip_gen: v7x
topology: tpu7x:2x2x1
jax: 0.10.0
libtpu: 0.0.40
codegen_flags: <defaults>
</compile_context>

<pallas_src>
import functools

import jax
import jax.numpy as jnp
from jax.experimental import pallas as pl
from jax.experimental.pallas import tpu as pltpu

_MIB = 1024 * 1024


# ---------------------------------------------------------------------------
# Small helpers
# ---------------------------------------------------------------------------
def _round_up(x, m):
    return (x + m - 1) // m * m


def _vmem_config():
    """(tile budget, vmem_limit_bytes) per TPU generation.

    Unknown / v7x default stays well under v7x's 32 MiB scoped default
    (64 MiB physical per TensorCore)."""
    try:
        kind = jax.devices()[0].device_kind.lower()
    except Exception:  # pragma: no cover - device query should not fail on TPU
        kind = ""
    if "v5 lite" in kind or "v5e" in kind or "v5litepod" in kind:
        return 10 * _MIB, 14 * _MIB          # v5e: 16 MiB scoped default
    if "v6" in kind:
        return 24 * _MIB, 30 * _MIB          # v6e: 128 MiB physical VMEM
    if "v2" in kind or "v3" in kind or "v4" in kind or "v5" in kind:
        return 16 * _MIB, 24 * _MIB          # other older gens: stay moderate
    return 20 * _MIB, 28 * _MIB              # v7x / unknown


def _vmem_need(tm, tn, tk, x_bytes, w_bytes, out_bytes):
    """Worst-case VMEM footprint of one grid step.

    Pallas double-buffers every streamed input and the output by default, so
    everything is counted twice (conservative even for grid-constant tiles)."""
    return (2 * tm * tk * x_bytes          # x tile (original dtype, cast in-kernel)
            + 2 * tk * tn * w_bytes        # weight tile
            + 2 * 8 * tn * 4               # f32 bias row (padded to 8 sublanes)
            + 2 * tm * tn * out_bytes      # output tile
            + tm * tn * 4                  # f32 accumulator scratch
            + 512 * 1024)                  # headroom for compiler-internal scratch


# ---------------------------------------------------------------------------
# Kernel
# ---------------------------------------------------------------------------
def _linear_bias_kernel(x_ref, w_ref, b_ref, o_ref, acc_ref, *, compute_dtype):
    # x_ref: (TM, TK) original dtype   w_ref: (TK, TN) compute dtype
    # b_ref: (1, TN) f32               o_ref: (TM, TN) out dtype
    # acc_ref: (TM, TN) f32 scratch, resident across the K grid axis.
    @pl.when(pl.program_id(2) == 0)
    def _init():
        acc_ref[...] = jnp.zeros_like(acc_ref)

    # The x cast happens here (VPU slot, hidden under the MXU) instead of as a
    # separate HBM round-trip in the wrapper.
    acc_ref[...] += jnp.dot(
        x_ref[...].astype(compute_dtype),
        w_ref[...],
        preferred_element_type=jnp.float32,
    )

    @pl.when(pl.program_id(2) == pl.num_programs(2) - 1)
    def _finalize():
        o_ref[...] = (acc_ref[...] + b_ref[...]).astype(o_ref.dtype)


# ---------------------------------------------------------------------------
# Pallas linear:  y = x2d @ wp + bp  (wp, bp already padded / cast)
# ---------------------------------------------------------------------------
def _pallas_linear(x2d, wp, bp, *, n_out, tk, tn, compute_dtype, out_dtype,
                   budget, vmem_limit):
    M, K = x2d.shape
    Kp, Np = wp.shape
    k_steps = Kp // tk
    n_steps = Np // tn

    x_bytes = jnp.dtype(x2d.dtype).itemsize
    w_bytes = jnp.dtype(wp.dtype).itemsize
    out_bytes = jnp.dtype(out_dtype).itemsize

    # Largest M tile that fits the per-generation VMEM budget, capped at what
    # the problem actually needs (8-sublane aligned).
    tm = 1024
    while tm > 8 and _vmem_need(tm, tn, tk, x_bytes, w_bytes, out_bytes) > budget:
        tm //= 2
    tm = max(8, min(tm, _round_up(max(M, 1), 8)))
    Mp = _round_up(M, tm)

    xp = x2d if (Mp == M and Kp == K) else jnp.pad(x2d, ((0, Mp - M), (0, Kp - K)))

    grid = (Mp // tm, n_steps, k_steps)

    cost = pl.CostEstimate(
        flops=2 * Mp * Kp * Np,
        transcendentals=0,
        bytes_accessed=(Mp * Kp * x_bytes + Kp * Np * w_bytes + Np * 4
                        + Mp * Np * out_bytes),
    )

    yp = pl.pallas_call(
        functools.partial(_linear_bias_kernel, compute_dtype=compute_dtype),
        out_shape=jax.ShapeDtypeStruct((Mp, Np), out_dtype),
        grid_spec=pltpu.PrefetchScalarGridSpec(
            num_scalar_prefetch=0,
            grid=grid,
            in_specs=[
                pl.BlockSpec((tm, tk), lambda i, j, k: (i, k)),  # x row tiles
                pl.BlockSpec((tk, tn), lambda i, j, k: (k, j)),  # W tiles
                pl.BlockSpec((1, tn), lambda i, j, k: (0, j)),   # bias
            ],
            out_specs=pl.BlockSpec((tm, tn), lambda i, j, k: (i, j)),
            scratch_shapes=[pltpu.VMEM((tm, tn), jnp.float32)],
        ),
        compiler_params=pltpu.CompilerParams(
            dimension_semantics=("parallel", "parallel", "arbitrary"),
            vmem_limit_bytes=vmem_limit,
        ),
        cost_estimate=cost,
    )(xp, wp, bp)

    if Mp == M and Np == n_out:
        return yp                      # no padding -> skip the extra copy
    return yp[:M, :n_out]


# ---------------------------------------------------------------------------
# Layer factory: the concrete m_lambda (TimeDistributed Linear)
# ---------------------------------------------------------------------------
def make_time_distributed_linear(w, b, *, compute_dtype=jnp.bfloat16,
                                 out_dtype=None, force_pallas=False):
    """Builds the m_lambda for LambdaLayer: a TimeDistributed Linear forward.

    w: (F_in, F_out) weight (PyTorch Linear stores (out, in); pass transposed).
    b: (F_out,) bias.
    Padded / cast parameters are materialized exactly once here (not per call).
    Set compute_dtype=jnp.float32 for full-fidelity (slower) MXU math.
    """
    K, N = w.shape
    budget, vmem_limit = _vmem_config()
    w_bytes = jnp.dtype(compute_dtype).itemsize

    # K tiling: contract the whole K per step up to 2048; stream 1024-wide
    # K blocks (P3 accumulator pattern) beyond that.
    kp128 = _round_up(K, 128)
    tk = kp128 if kp128 <= 2048 else 1024
    Kp = _round_up(K, tk)

    # N padding: 256-wide stripes fill the 2x256^2 MXUs on v6e / v7x;
    # 128 keeps small outputs lane-dense without over-padding.
    n_align = 256 if N > 128 else 128
    Np = _round_up(N, n_align)

    # N tiling: take the full Np only if an M tile of at least 128 still fits
    # the budget; otherwise stream N in smaller stripes.
    tn = 128
    for cand in [Np] + [t for t in (2048, 1024, 512, 256) if t < Np and Np % t == 0]:
        if _vmem_need(128, cand, tk, 4, w_bytes, 4) <= budget:
            tn = cand
            break

    # Pre-materialize padded parameters once.
    wp = jnp.pad(w, ((0, Kp - K), (0, Np - N))).astype(compute_dtype)
    bp = jnp.pad(b, (0, Np - N)).astype(jnp.float32).reshape(1, Np)

    @jax.jit
    def forward(x):
        odt = jnp.dtype(out_dtype) if out_dtype is not None else x.dtype
        lead = x.shape[:-1]
        x2d = x.reshape(-1, x.shape[-1])
        m = x2d.shape[0]
        # Sub-few-million-MAC problems: kernel launch + per-step overhead
        # dominates -> plain XLA dot (same bf16 MXU feed, f32 accumulation).
        if not force_pallas and m * K * N < (1 << 22):
            y2d = (jnp.dot(x2d.astype(compute_dtype), w.astype(compute_dtype),
                           preferred_element_type=jnp.float32) + b).astype(odt)
        else:
            y2d = _pallas_linear(x2d, wp, bp, n_out=N, tk=tk, tn=tn,
                                 compute_dtype=compute_dtype, out_dtype=odt,
                                 budget=budget, vmem_limit=vmem_limit)
        return y2d.reshape(*lead, N)

    return forward


def lambda_layer(m_lambda):
    """LambdaLayer equivalent: forward(x) = m_lambda(x)."""
    # TODO(synk): an arbitrary Python m_lambda has no general Pallas lowering;
    # only the concrete TimeDistributed-Linear lambda above is kernelized.
    def forward(x):
        return m_lambda(x)
    return forward


# ---------------------------------------------------------------------------
# Demo / correctness check
# ---------------------------------------------------------------------------
if __name__ == "__main__":
    key = jax.random.PRNGKey(0)
    kx, kw, kb, kx2, kw2, kb2 = jax.random.split(key, 6)

    # Shapes consistent with a TimeDistributed(Linear) lambda: (T, N, F_in).
    T, N, F_IN, F_OUT = 8, 2, 32, 32
    x = jax.random.normal(kx, (T, N, F_IN), dtype=jnp.float32)
    w = jax.random.normal(kw, (F_IN, F_OUT), dtype=jnp.float32) * 0.05
    b = jax.random.normal(kb, (F_OUT,), dtype=jnp.float32) * 0.05

    layer = lambda_layer(make_time_distributed_linear(w, b, force_pallas=True))
    y = jax.block_until_ready(layer(x))
    assert y.shape == (T, N, F_OUT)

    x2d = x.reshape(T * N, F_IN)
    ref_bf16 = (jnp.dot(x2d.astype(jnp.bfloat16), w.astype(jnp.bfloat16),
                        preferred_element_type=jnp.float32)
                + b).reshape(T, N, F_OUT)
    ref_f32 = (x2d @ w + b).reshape(T, N, F_OUT)
    assert jnp.allclose(y, ref_bf16, atol=1e-2, rtol=1e-2)
    assert jnp.allclose(y, ref_f32, atol=5e-2, rtol=5e-2)  # bf16 rounding only

    # Second check: awkward shapes that exercise padding on every dimension.
    T2, N2, F_IN2, F_OUT2 = 5, 3, 200, 96
    x2 = jax.random.normal(kx2, (T2, N2, F_IN2), dtype=jnp.float32)
    w2 = jax.random.normal(kw2, (F_IN2, F_OUT2), dtype=jnp.float32) * 0.05
    b2 = jax.random.normal(kb2, (F_OUT2,), dtype=jnp.float32) * 0.05
    layer2 = lambda_layer(make_time_distributed_linear(w2, b2, force_pallas=True))
    y2 = jax.block_until_ready(layer2(x2))
    ref2 = (jnp.dot(x2.reshape(-1, F_IN2).astype(jnp.bfloat16),
                    w2.astype(jnp.bfloat16),
                    preferred_element_type=jnp.float32)
            + b2).reshape(T2, N2, F_OUT2)
    assert y2.shape == (T2, N2, F_OUT2)
    assert jnp.allclose(y2, ref2, atol=1e-2, rtol=1e-2)

    print("KERNEL_OK")
</pallas_src>

<mosaic_0001>
module attributes {stable_mosaic.version = 11 : i64} {
  func.func @_linear_bias_kernel(%arg0: i32, %arg1: i32, %arg2: i32, %arg3: memref<16x128xf32, #tpu.memory_space<vmem>>, %arg4: memref<128x128xbf16, #tpu.memory_space<vmem>>, %arg5: memref<1x128xf32, #tpu.memory_space<vmem>>, %arg6: memref<16x128xf32, #tpu.memory_space<vmem>>, %arg7: memref<16x128xf32, #tpu.memory_space<vmem>>) attributes {dimension_semantics = [#tpu.dimension_semantics<parallel>, #tpu.dimension_semantics<parallel>, #tpu.dimension_semantics<arbitrary>], iteration_bounds = array<i64: 1, 1, 1>, scalar_prefetch = 0 : i64, scratch_operands = 1 : i64, tpu.core_type = #tpu.core_type<tc>, window_params = [{transform_indices = @transform_0, window_bounds = array<i64: 16, 128>}, {transform_indices = @transform_1, window_bounds = array<i64: 128, 128>}, {transform_indices = @transform_2, window_bounds = array<i64: 1, 128>}, {transform_indices = @transform_3, window_bounds = array<i64: 16, 128>}]} {
    %c0_i32 = arith.constant 0 : i32
    %0 = arith.cmpi eq, %arg2, %c0_i32 : i32
    %1 = arith.extui %0 : i1 to i32
    %c0_i32_0 = arith.constant 0 : i32
    %2 = arith.cmpi ne, %1, %c0_i32_0 : i32
    scf.if %2 {
      %cst_10 = arith.constant 0.000000e+00 : f32
      %13 = vector.broadcast %cst_10 : f32 to vector<16x128xf32>
      %c0_11 = arith.constant 0 : index
      %c0_12 = arith.constant 0 : index
      %14 = vector.load %arg7[%c0_11, %c0_12] : memref<16x128xf32, #tpu.memory_space<vmem>>, vector<16x128xf32>
      tpu.vector_store %arg7[%c0_11, %c0_12], %13 {strides = array<i32>} : memref<16x128xf32, #tpu.memory_space<vmem>>, vector<16x128xf32>,
    } else {
    }
    %c0 = arith.constant 0 : index
    %c0_1 = arith.constant 0 : index
    %3 = vector.load %arg7[%c0, %c0_1] : memref<16x128xf32, #tpu.memory_space<vmem>>, vector<16x128xf32>
    %c0_2 = arith.constant 0 : index
    %c0_3 = arith.constant 0 : index
    %4 = vector.load %arg3[%c0_2, %c0_3] : memref<16x128xf32, #tpu.memory_space<vmem>>, vector<16x128xf32>
    %5 = arith.truncf %4 : vector<16x128xf32> to vector<16x128xbf16>
    %c0_4 = arith.constant 0 : index
    %c0_5 = arith.constant 0 : index
    %6 = vector.load %arg4[%c0_4, %c0_5] : memref<128x128xbf16, #tpu.memory_space<vmem>>, vector<128x128xbf16>
    %cst = arith.constant dense<0.000000e+00> : vector<16x128xf32>
    %7 = tpu.matmul %5, %6, %cst {dimension_numbers = #tpu.dot_dimension_numbers<[1], [0], [0], [1], [0, 0, 1, 1], [], []>} : vector<16x128xbf16>, vector<128x128xbf16>, vector<16x128xf32> -> vector<16x128xf32>
    %8 = arith.addf %3, %7 : vector<16x128xf32>
    %c0_6 = arith.constant 0 : index
    %c0_7 = arith.constant 0 : index
    %9 = vector.load %arg7[%c0_6, %c0_7] : memref<16x128xf32, #tpu.memory_space<vmem>>, vector<16x128xf32>
    tpu.vector_store %arg7[%c0_6, %c0_7], %8 {strides = array<i32>} : memref<16x128xf32, #tpu.memory_space<vmem>>, vector<16x128xf32>,
    %c0_i32_8 = arith.constant 0 : i32
    %10 = arith.cmpi eq, %arg2, %c0_i32_8 : i32
    %11 = arith.extui %10 : i1 to i32
    %c0_i32_9 = arith.constant 0 : i32
    %12 = arith.cmpi ne, %11, %c0_i32_9 : i32
    scf.if %12 {
      %c0_10 = arith.constant 0 : index
      %c0_11 = arith.constant 0 : index
      %13 = vector.load %arg7[%c0_10, %c0_11] : memref<16x128xf32, #tpu.memory_space<vmem>>, vector<16x128xf32>
      %c0_12 = arith.constant 0 : index
      %c0_13 = arith.constant 0 : index
      %14 = vector.load %arg5[%c0_12, %c0_13] : memref<1x128xf32, #tpu.memory_space<vmem>>, vector<1x128xf32>
      %15 = vector.broadcast %14 : vector<1x128xf32> to vector<16x128xf32>
      %16 = arith.addf %13, %15 : vector<16x128xf32>
      %c0_14 = arith.constant 0 : index
      %c0_15 = arith.constant 0 : index
      %17 = vector.load %arg6[%c0_14, %c0_15] : memref<16x128xf32, #tpu.memory_space<vmem>>, vector<16x128xf32>
      tpu.vector_store %arg6[%c0_14, %c0_15], %16 {strides = array<i32>} : memref<16x128xf32, #tpu.memory_space<vmem>>, vector<16x128xf32>,
    } else {
    }
    return
  }
  func.func @transform_0(%arg0: i32, %arg1: i32, %arg2: i32) -> (i32, i32) {
    %c0_i32 = arith.constant 0 : i32
    return %arg0, %arg2 : i32, i32
  }
  func.func @transform_1(%arg0: i32, %arg1: i32, %arg2: i32) -> (i32, i32) {
    %c0_i32 = arith.constant 0 : i32
    return %arg2, %arg1 : i32, i32
  }
  func.func @transform_2(%arg0: i32, %arg1: i32, %arg2: i32) -> (i32, i32) {
    %c0_i32 = arith.constant 0 : i32
    %c0_i32_0 = arith.constant 0 : i32
    return %c0_i32, %arg1 : i32, i32
  }
  func.func @transform_3(%arg0: i32, %arg1: i32, %arg2: i32) -> (i32, i32) {
    %c0_i32 = arith.constant 0 : i32
    return %arg0, %arg1 : i32, i32
  }
}

</mosaic_0001>

<bundles_post_ra>
// kernel: forward.1
= control target key start
LH: loop header
LB: loop body
LE: loop exit
PB: predicated region body
PF: predicated region fallthrough
CT: control target
= control target key end

     0   :  { %8 = vsyncpa [#allocation4], 0  ;;  %s346_s0 = inlined_call_operand.vmem [shape: f32[16,128], index: 0, kind: input, shape index: {}]   ;;  %s347_s1 = inlined_call_operand.hbm [shape: bf16[128,128], index: 1, kind: input, shape index: {}]   ;;  %s348_s2 = inlined_call_operand.vmem [shape: f32[1,128], index: 2, kind: input, shape index: {}]   ;;  %s349_s3 = inlined_call_operand.hbm [shape: f32[16,128], index: 3, kind: output, shape index: {}]  }
   0x1   :  { %9 = vsyncpa [#allocation5], 0  ;;  %s285_s12 = smov [#allocation3]   ;;  %s237_s16 = scalar_lea.hbm %s347_s1, 1024 }
   0x2   :  { %s17_s13 = sshll.u32 %s285_s12, 4  ;;  %p238_p0 = scmp.ne.s32.totalorder %s347_s1, %s237_s16  ;;  %s18_s13 = int_to_ptr.vmem [resolvable:$true] %s17_s13 }
   0x3   :  { %p241_p1 = scmp.lt.u32.totalorder %s237_s16, %s347_s1 }
   0x5   :  { %p243_p2 = pnand %p241_p1, %p238_p0 }
   0x7   :  { %246 = shalt.err (!%p243_p2)
}
   0x8   :  { %s247_s21 = scalar_lea.vmem %s18_s13, 1024  ;;  %p252_p4 = scmp.lt.s32.totalorder %s18_s13, %s18_s13 }
   0x9   :  { %p248_p3 = scmp.ne.s32.totalorder %s18_s13, %s247_s21  ;;  %p253_p5 = scmp.lt.s32.totalorder %s247_s21, %s247_s21 }
   0xb   :  { %p254_p6 = por %p253_p5, %p252_p4 }
   0xd   :  { %p255_p7 = pnand %p254_p6, %p248_p3 }
   0xf   :  { %258 = shalt.err (!%p255_p7)
}
  0x10   :  { %s286_s22 = smov 64   ;;  %s287_s23 = smov 4  }
  0x11   :  { %23 = dma.hbm_to_vmem [thread:$0]  %s347_s1, 1024, %s18_s13, [#allocation4], %s286_s22, %s286_s22, %s287_s23  }
  0x12   :  { %281 = dma.done.wait [#allocation4], 1024  }
  0x13   :  { %282 = vsyncadd [#allocation4], 4294966272  ;;  %v288_v0 = vmov 0.0   ;;  %vm289_vm0 = vmmov 0   ;;  %v229_v1 = vld [vmem:[#allocation3] sm:$0xff]   ;;  %v230_v2 = vld [vmem:[#allocation3 + $0x8] sm:$0xff]  }
  0x14   :  { %201 = vmatprep.subr.bf16.mxu0 %v288_v0  ;;  %217 = vmatprep.mubr.msk.bf16.mxu0 %vm289_vm0, %v288_v0  ;;  %v231_v3 = vld [vmem:[#allocation3 + $0x10] sm:$0xff]   ;;  %v232_v4 = vld [vmem:[#allocation3 + $0x18] sm:$0xff]   ;;  %v233_v5 = vld [vmem:[#allocation3 + $0x20] sm:$0xff]   ;;  %s290_s4 = smov [#allocation6]  }
  0x15   :  { %202 = vmatpush3.bf16.msra.mxu0 %v229_v1  ;;  %v234_v6 = vld [vmem:[#allocation3 + $0x28] sm:$0xff]   ;;  %v235_v7 = vld [vmem:[#allocation3 + $0x30] sm:$0xff]   ;;  %v236_v8 = vld [vmem:[#allocation3 + $0x38] sm:$0xff]   ;;  %s171_s5 = sshll.u32 %s290_s4, 4  ;;  %s172_s5 = int_to_ptr.vmem [resolvable:$true] %s171_s5 }
  0x16   :  { %203 = vmatprep.subr.bf16.mxu0 %v288_v0  ;;  %v38_v9 = vld [vmem:[%s346_s0] sm:$0xff]  ;;  %v39_v10 = vld [vmem:[%s346_s0 + $0x8] sm:$0xff]  ;;  %s259_s0 = scalar_lea.vmem %s172_s5, 256  ;;  %p264_p9 = scmp.lt.s32.totalorder %s172_s5, %s172_s5 }
  0x17   :  { %v40_v11 = vpack.c.bf16 %v39_v10, %v38_v9  ;;  %v191_v12 = vld [vmem:[%s348_s2] ss:$0 sm:$0xff]  ;;  %p260_p8 = scmp.ne.s32.totalorder %s172_s5, %s259_s0  ;;  %p265_p10 = scmp.lt.s32.totalorder %s259_s0, %s259_s0 }
  0x19   :  { %204 = vmatpush3.bf16.msra.mxu0 %v230_v2  ;;  %p266_p11 = por %p265_p10, %p264_p9 }
  0x1a   :  { %205 = vmatprep.subr.bf16.mxu0 %v288_v0 }
  0x1b   :  { %p267_p12 = pnand %p266_p11, %p260_p8 }
  0x1d   :  { %206 = vmatpush3.bf16.msra.mxu0 %v231_v3 }
  0x1e   :  { %207 = vmatprep.subr.bf16.mxu0 %v288_v0 }
  0x21   :  { %208 = vmatpush3.bf16.msra.mxu0 %v232_v4 }
  0x22   :  { %209 = vmatprep.subr.bf16.mxu0 %v288_v0 }
  0x25   :  { %210 = vmatpush3.bf16.msra.mxu0 %v233_v5 }
  0x26   :  { %211 = vmatprep.subr.bf16.mxu0 %v288_v0 }
  0x29   :  { %212 = vmatpush3.bf16.msra.mxu0 %v234_v6 }
  0x2a   :  { %213 = vmatprep.subr.bf16.mxu0 %v288_v0 }
  0x2d   :  { %214 = vmatpush3.bf16.msra.mxu0 %v235_v7 }
  0x2e   :  { %215 = vmatprep.subr.bf16.mxu0 %v288_v0 }
  0x31   :  { %216 = vmatpush3.bf16.msra.mxu0 %v236_v8 }
  0x34   :  { %218 = vmatmul.mubr.bf16.vlgmr.msra.gmra.mrb[0].mxu0 %v40_v11 }
 0x107   :  { %v139_v13 = vpop.f32.mrb[0].mxu0 }
 0x108   :  { %v162_v14 = vadd.f32 %v191_v12, %v139_v13  ;;  %v219_v15 = vpop.f32.mrb[1].mxu0 }
 0x109   :  { %v142_v16 = vpop.f32.mrb[2].mxu0 }
 0x10a   :  { %164 = vst [vmem:[#allocation6] sm:$0xff] %v162_v14  ;;  %v163_v17 = vadd.f32 %v191_v12, %v142_v16  ;;  %v220_v18 = vpop.f32.mrb[3].mxu0 }
 0x10c   :  { %165 = vst [vmem:[#allocation6 + $0x8] sm:$0xff] %v163_v17 }
 0x10d   :  { %270 = shalt.err (!%p267_p12)
}
 0x10e   :  { %s271_s7 = scalar_lea.hbm %s349_s3, 256 }
 0x10f   :  { %p272_p13 = scmp.ne.s32.totalorder %s349_s3, %s271_s7  ;;  %p275_p0 = scmp.lt.u32.totalorder %s271_s7, %s349_s3 }
 0x111   :  { %p277_p1 = pnand %p275_p0, %p272_p13 }
 0x113   :  { %280 = shalt.err (!%p277_p1)
}
 0x114   :  { %s291_s12 = smov 128   ;;  %s292_s13 = smov 8  }
 0x115   :  { %177 = dma.vmem_to_hbm [thread:$0]  %s172_s5, 256, %s349_s3, [#allocation5], %s291_s12, %s291_s12, %s292_s13  }
 0x116   :  { %283 = dma.done.wait [#allocation5], 256  }
 0x117   :  { %284 = vsyncadd [#allocation5], 4294967040 }
 0x118   :  { %181 = vsyncpa [#allocation4], 1 }
 0x119   :  { %182 = vsyncpa [#allocation5], 1 }

</bundles_post_ra>
